<compile_context>
chip_gen: v6e
topology: v6e:2x2x1
jax: 0.10.0
libtpu: 0.0.40
codegen_flags: <defaults>
</compile_context>

<pallas_src>
import jax
import jax.numpy as jnp
from jax.experimental import pallas as pl
from jax.experimental.pallas import tpu as pltpu


def _integer_activation_kernel(x_ref, o_ref):
    # Pure VPU elementwise hot path: round-half-to-even, then absolute value.
    o_ref[...] = jnp.abs(jnp.round(x_ref[...]))


def _sublane_for_dtype(dtype) -> int:
    """Minimum sublane multiple for the packed dtype (8 f32, 16 bf16, 32 int8/fp8)."""
    itemsize = jnp.dtype(dtype).itemsize
    return {4: 8, 2: 16, 1: 32}.get(itemsize, 8)


def integer_activation(x: jax.Array) -> jax.Array:
    """abs(round(x)), elementwise, same shape/dtype as input (any shape)."""
    orig_shape = x.shape
    dtype = x.dtype

    flat = x.reshape(-1)
    n = flat.shape[0]
    lane = 128
    sub = _sublane_for_dtype(dtype)

    # 128-aligned bulk goes through the kernel; tiny tail (< 128 elems) in JAX.
    n_bulk = (n // lane) * lane
    if n_bulk == 0:
        # Entire input is smaller than one lane row; kernel not worth launching.
        return jnp.abs(jnp.round(flat)).reshape(orig_shape)

    bulk = flat[:n_bulk]
    rows = n_bulk // lane

    # Large lane-dense row tile: 4096 rows * 128 lanes * 4 B = 2 MiB (f32).
    tr = 4096
    if rows < tr:
        # Small input: use one block. Prefer a sublane-aligned tile; a block
        # equal to the full array dims is always legal regardless of alignment.
        tr = max(sub, (rows // sub) * sub)
        if rows % tr != 0:
            tr = rows

    x2d = bulk.reshape(rows, lane)
    grid = (pl.cdiv(rows, tr),)  # partial last block handled by Pallas masking

    itemsize = jnp.dtype(dtype).itemsize
    cost = pl.CostEstimate(
        flops=2 * n_bulk,
        transcendentals=0,
        bytes_accessed=2 * n_bulk * itemsize,
    )

    out2d = pl.pallas_call(
        _integer_activation_kernel,
        out_shape=jax.ShapeDtypeStruct((rows, lane), dtype),
        grid_spec=pltpu.PrefetchScalarGridSpec(
            num_scalar_prefetch=0,
            grid=grid,
            in_specs=[pl.BlockSpec((tr, lane), lambda i: (i, 0))],
            out_specs=pl.BlockSpec((tr, lane), lambda i: (i, 0)),
        ),
        compiler_params=pltpu.CompilerParams(
            dimension_semantics=("parallel",),
        ),
        cost_estimate=cost,
    )(x2d)

    out_bulk = out2d.reshape(-1)
    if n_bulk != n:
        # Sub-128-element tail: compute in plain JAX, avoid padding the whole tensor.
        tail_out = jnp.abs(jnp.round(flat[n_bulk:]))
        out_flat = jnp.concatenate([out_bulk, tail_out])
    else:
        out_flat = out_bulk

    return out_flat.reshape(orig_shape)


if __name__ == "__main__":
    key = jax.random.PRNGKey(0)

    # Primary test: small NCHW input consistent with a conv-style module.
    x = jax.random.normal(key, (2, 4, 16, 16), dtype=jnp.float32) * 3.0
    y = integer_activation(x)
    jax.block_until_ready(y)
    y_ref = jnp.abs(jnp.round(x))
    assert y.shape == x.shape and y.dtype == x.dtype
    assert jnp.allclose(y, y_ref), "mismatch vs reference (aligned case)"

    # Secondary test: non-128-aligned element count exercises the bulk+tail path.
    x2 = jax.random.normal(jax.random.PRNGKey(0), (2, 3, 9, 5), dtype=jnp.float32) * 3.0
    y2 = integer_activation(x2)
    jax.block_until_ready(y2)
    assert y2.shape == x2.shape and y2.dtype == x2.dtype
    assert jnp.allclose(y2, jnp.abs(jnp.round(x2))), "mismatch vs reference (tail case)"

    print("KERNEL_OK")
</pallas_src>

<mosaic_0001>
module attributes {stable_mosaic.version = 11 : i64} {
  func.func @_integer_activation_kernel(%arg0: i32, %arg1: memref<16x128xf32, #tpu.memory_space<vmem>>, %arg2: memref<16x128xf32, #tpu.memory_space<vmem>>) attributes {dimension_semantics = [#tpu.dimension_semantics<parallel>], iteration_bounds = array<i64: 1>, scalar_prefetch = 0 : i64, scratch_operands = 0 : i64, tpu.core_type = #tpu.core_type<tc>, window_params = [{transform_indices = @transform_0, window_bounds = array<i64: 16, 128>}, {transform_indices = @transform_1, window_bounds = array<i64: 16, 128>}]} {
    %c0 = arith.constant 0 : index
    %c0_0 = arith.constant 0 : index
    %0 = vector.load %arg1[%c0, %c0_0] : memref<16x128xf32, #tpu.memory_space<vmem>>, vector<16x128xf32>
    %1 = math.roundeven %0 : vector<16x128xf32>
    %2 = math.absf %1 : vector<16x128xf32>
    %c0_1 = arith.constant 0 : index
    %c0_2 = arith.constant 0 : index
    %3 = vector.load %arg2[%c0_1, %c0_2] : memref<16x128xf32, #tpu.memory_space<vmem>>, vector<16x128xf32>
    tpu.vector_store %arg2[%c0_1, %c0_2], %2 {strides = array<i32>} : memref<16x128xf32, #tpu.memory_space<vmem>>, vector<16x128xf32>,
    return
  }
  func.func @transform_0(%arg0: i32) -> (i32, i32) {
    %c0_i32 = arith.constant 0 : i32
    %c0_i32_0 = arith.constant 0 : i32
    return %arg0, %c0_i32 : i32, i32
  }
  func.func @transform_1(%arg0: i32) -> (i32, i32) {
    %c0_i32 = arith.constant 0 : i32
    %c0_i32_0 = arith.constant 0 : i32
    return %arg0, %c0_i32 : i32, i32
  }
}

</mosaic_0001>

<bundles_post_ra>
// kernel: tpu_custom_call.1
= control target key start
LH: loop header
LB: loop body
LE: loop exit
PB: predicated region body
PF: predicated region fallthrough
CT: control target
= control target key end

     0   :  { %6 = vsyncpa [#allocation3], 0  ;;  %s138_s0 = inlined_call_operand.hbm [shape: f32[16,128], index: 0, kind: input, shape index: {}]   ;;  %s139_s1 = inlined_call_operand.hbm [shape: f32[16,128], index: 1, kind: output, shape index: {}]  }
   0x1   :  { %7 = vsyncpa [#allocation4], 0  ;;  %s112_s6 = smov [#allocation2]  }
   0x2   :  { %s13_s7 = sshll.u32 %s112_s6, 4  ;;  %s14_s7 = int_to_ptr.vmem [resolvable:$true] %s13_s7 }
   0x3   :  { %s76_s8 = scalar_lea.vmem %s14_s7, 256  ;;  %p81_p1 = scmp.lt.s32.totalorder %s14_s7, %s14_s7 }
   0x4   :  { %p77_p0 = scmp.ne.s32.totalorder %s14_s7, %s76_s8  ;;  %p82_p2 = scmp.lt.s32.totalorder %s76_s8, %s76_s8 }
   0x6   :  { %p83_p3 = por %p82_p2, %p81_p1 }
   0x8   :  { %p84_p4 = pnand %p83_p3, %p77_p0 }
   0xa   :  { %87 = shalt.err (!%p84_p4)
}
   0xb   :  { %s113_s9 = smov 128   ;;  %s114_s10 = smov 8  }
   0xc   :  { %19 = dma.hbm_to_vmem [thread:$0]  %s138_s0, 256, %s14_s7, [#allocation3], %s113_s9, %s113_s9, %s114_s10  }
   0xd   :  { %108 = dma.done.wait [#allocation3], 256  }
   0xe   :  { %109 = vsyncadd [#allocation3], 4294967040  ;;  %v23_v0 = vld [vmem:[#allocation2] sm:$0xff]  ;;  %v24_v1 = vld [vmem:[#allocation2 + $0x8] sm:$0xff]  ;;  %s115_s13 = smov [#allocation5]  }
   0xf   :  { %v50_v2 = vcvt.f32.s32 %v23_v0  ;;  %v48_v3 = vand.u32 2147483647, %v23_v0  ;;  %v58_v4 = vcvt.f32.s32 %v24_v1  ;;  %v53_v6 = vand.u32 2147483648, %v23_v0  ;;  %s36_s0 = sshll.u32 %s115_s13, 4  ;;  %s37_s0 = int_to_ptr.vmem [resolvable:$true] %s36_s0 }
  0x10   :  { %v56_v7 = vand.u32 2147483647, %v24_v1  ;;  %v61_v9 = vand.u32 2147483648, %v24_v1  ;;  %s88_s14 = scalar_lea.vmem %s37_s0, 256  ;;  %p93_p6 = scmp.lt.s32.totalorder %s37_s0, %s37_s0 }
  0x11   :  { %v51_v5 = vcvt.s32.f32 %v50_v2  ;;  %v59_v8 = vcvt.s32.f32 %v58_v4  ;;  %vm49_vm0 = vcmp.lt.f32.partialorder %v48_v3, 8388608.0  ;;  %p89_p5 = scmp.ne.s32.totalorder %s37_s0, %s88_s14  ;;  %p94_p7 = scmp.lt.s32.totalorder %s88_s14, %s88_s14 }
  0x12   :  { %vm57_vm1 = vcmp.lt.f32.partialorder %v56_v7, 8388608.0 }
  0x13   :  { %v52_v10 = vand.u32 2147483647, %v51_v5  ;;  %v60_v11 = vand.u32 2147483647, %v59_v8  ;;  %p95_p8 = por %p94_p7, %p93_p6 }
  0x15   :  { %v54_v12 = vor.u32 %v53_v6, %v52_v10  ;;  %v62_v13 = vor.u32 %v61_v9, %v60_v11  ;;  %p96_p9 = pnand %p95_p8, %p89_p5 }
  0x17   :  { %v55_v14 = vsel %vm49_vm0, %v54_v12, %v23_v0  ;;  %v63_v16 = vsel %vm57_vm1, %v62_v13, %v24_v1 }
  0x18   :  { %v27_v15 = vand.u32 2147483647, %v55_v14  ;;  %v28_v17 = vand.u32 2147483647, %v63_v16 }
  0x1a   :  { %29 = vst [vmem:[#allocation5] sm:$0xff] %v27_v15  ;;  %30 = vst [vmem:[#allocation5 + $0x8] sm:$0xff] %v28_v17 }
  0x1b   :  { %99 = shalt.err (!%p96_p9)
}
  0x1c   :  { %42 = dma.vmem_to_hbm [thread:$0]  %s37_s0, 256, %s139_s1, [#allocation4], %s113_s9, %s113_s9, %s114_s10  }
  0x1d   :  { %110 = dma.done.wait [#allocation4], 256  }
  0x1e   :  { %111 = vsyncadd [#allocation4], 4294967040 }
  0x1f   :  { %46 = vsyncpa [#allocation3], 1 }
  0x20   :  { %47 = vsyncpa [#allocation4], 1 }

</bundles_post_ra>
